<compile_context>
chip_gen: v5e
topology: v5e:2x2
jax: 0.10.0
libtpu: 0.0.40
codegen_flags: <defaults>
</compile_context>

<pallas_src>
import functools

import jax
import jax.numpy as jnp
from jax.experimental import pallas as pl
from jax.experimental.pallas import tpu as pltpu

IN_DIM = 18
H1, H2, H3 = 32, 64, 32
HEAD_PAD = 128   # head weight zero-padded to a full 128-lane tile (free on the MXU)


def mlp_kernel(x_ref, w_ref, b_ref, o_ref):
    # x_ref: (TILE, 18) f32   (streamed per grid step; cast to bf16 in-kernel)
    # w_ref: (4, 64, 128) bf16 (zero-padded weight stack, VMEM-resident)
    # b_ref: (4, 128) f32      (zero-padded bias stack, VMEM-resident)
    # o_ref: (TILE, num_actions) f32
    x = x_ref[...].astype(jnp.bfloat16)           # VPU cast; VPU has huge slack here

    # Layer 1: (TILE,18) @ (18,32) -> f32 acc; bias + ReLU in f32.
    # TODO(synk): pad layer-1 fan_in to 24 (and x's feature dim) to avoid the
    # sublane-unaligned :18 weight slice; minor win, skipped for simplicity.
    h = jnp.dot(x, w_ref[0, :IN_DIM, :H1], preferred_element_type=jnp.float32)
    h = jnp.maximum(h + b_ref[0:1, :H1], 0.0)

    # Layer 2: (TILE,32) @ (32,64)
    h = jnp.dot(h.astype(jnp.bfloat16), w_ref[1, :H1, :H2],
                preferred_element_type=jnp.float32)
    h = jnp.maximum(h + b_ref[1:2, :H2], 0.0)

    # Layer 3: (TILE,64) @ (64,32)
    h = jnp.dot(h.astype(jnp.bfloat16), w_ref[2, :H2, :H3],
                preferred_element_type=jnp.float32)
    h = jnp.maximum(h + b_ref[2:3, :H3], 0.0)

    # Head: (TILE,32) @ (32,128); only the first num_actions lanes are stored,
    # so the HBM writeback is num_actions wide instead of 128.
    h = jnp.dot(h.astype(jnp.bfloat16), w_ref[3, :H3, :],
                preferred_element_type=jnp.float32)
    h = h + b_ref[3:4, :]
    num_actions = o_ref.shape[1]
    o_ref[...] = h[:, :num_actions].astype(o_ref.dtype)


def _round_up(n, m):
    return ((n + m - 1) // m) * m


def pack_params(params):
    """Pack the 8 param tensors into 2 arrays (call ONCE, outside the hot path)."""
    w1, b1, w2, b2, w3, b3, w4, b4 = params
    num_actions = w4.shape[1]
    assert num_actions <= HEAD_PAD  # TODO(synk): widen head padding for >128 actions
    w_stack = jnp.zeros((4, 64, HEAD_PAD), jnp.bfloat16)
    w_stack = w_stack.at[0, :IN_DIM, :H1].set(w1.astype(jnp.bfloat16))
    w_stack = w_stack.at[1, :H1, :H2].set(w2.astype(jnp.bfloat16))
    w_stack = w_stack.at[2, :H2, :H3].set(w3.astype(jnp.bfloat16))
    w_stack = w_stack.at[3, :H3, :num_actions].set(w4.astype(jnp.bfloat16))
    b_stack = jnp.zeros((4, HEAD_PAD), jnp.float32)
    b_stack = b_stack.at[0, :H1].set(b1.reshape(-1).astype(jnp.float32))
    b_stack = b_stack.at[1, :H2].set(b2.reshape(-1).astype(jnp.float32))
    b_stack = b_stack.at[2, :H3].set(b3.reshape(-1).astype(jnp.float32))
    b_stack = b_stack.at[3, :num_actions].set(b4.reshape(-1).astype(jnp.float32))
    return w_stack, b_stack


def _tile_and_pad(B, b_tile):
    """Balanced batch tiling: padding < 8*grid rows; >=2 steps for v7x megacore."""
    grid = max(1, -(-B // b_tile))          # cdiv
    if B >= 16 and grid == 1:
        grid = 2                            # let both v7x TensorCores get a tile
    tile = _round_up(-(-B // grid), 8)      # sublane-aligned balanced tile
    b_pad = grid * tile
    return grid, tile, b_pad


def net_forward(x, w_stack, b_stack, *, num_actions, b_tile=4096):
    """Forward pass of Net. x: any shape that flattens to (-1, 18), f32."""
    x = x.reshape(-1, IN_DIM).astype(jnp.float32)   # mirrors x.view(-1, 18)
    B = x.shape[0]

    grid, tile, b_pad = _tile_and_pad(B, b_tile)
    if b_pad != B:
        # < 8*grid padded rows; their garbage outputs are dropped below.
        x = jnp.pad(x, ((0, b_pad - B), (0, 0)))

    out = pl.pallas_call(
        mlp_kernel,
        out_shape=jax.ShapeDtypeStruct((b_pad, num_actions), jnp.float32),
        grid=(grid,),
        in_specs=[
            pl.BlockSpec((tile, IN_DIM), lambda i: (i, 0)),        # streamed x tiles
            pl.BlockSpec((4, 64, HEAD_PAD), lambda i: (0, 0, 0)),  # resident weights
            pl.BlockSpec((4, HEAD_PAD), lambda i: (0, 0)),         # resident biases
        ],
        out_specs=pl.BlockSpec((tile, num_actions), lambda i: (i, 0)),
        compiler_params=pltpu.CompilerParams(
            dimension_semantics=("parallel",)),      # v7x megacore sharding
    )(x, w_stack, b_stack)

    return out[:B] if b_pad != B else out


def init_params(key, num_actions):
    """Deterministic init mimicking PyTorch nn.Linear default (U(-1/sqrt(fan_in), +))."""
    dims = [(IN_DIM, H1), (H1, H2), (H2, H3), (H3, num_actions)]
    params = []
    for fan_in, fan_out in dims:
        key, kw, kb = jax.random.split(key, 3)
        bound = 1.0 / (fan_in ** 0.5)
        w = jax.random.uniform(kw, (fan_in, fan_out), jnp.float32, -bound, bound)
        b = jax.random.uniform(kb, (1, fan_out), jnp.float32, -bound, bound)
        params.extend([w, b])
    return tuple(params)


def reference_forward(x, params):
    """Plain-JAX f32 reference for correctness check."""
    x = x.reshape(-1, IN_DIM).astype(jnp.float32)
    w1, b1, w2, b2, w3, b3, w4, b4 = params
    h = jnp.maximum(x @ w1 + b1, 0.0)
    h = jnp.maximum(h @ w2 + b2, 0.0)
    h = jnp.maximum(h @ w3 + b3, 0.0)
    return h @ w4 + b4


if __name__ == "__main__":
    key = jax.random.PRNGKey(0)
    key, kx1, kx2 = jax.random.split(key, 3)

    num_actions = 4
    params = init_params(key, num_actions)
    # Pack once (outside the per-step hot path / jit trace).
    w_stack, b_stack = pack_params(params)

    fwd = jax.jit(functools.partial(net_forward, num_actions=num_actions))

    # Case 1: plain (batch, 18) input.
    x1 = jax.random.normal(kx1, (8, IN_DIM), jnp.float32)
    out1 = jax.block_until_ready(fwd(x1, w_stack, b_stack))
    ref1 = reference_forward(x1, params)
    assert out1.shape == (8, num_actions)
    assert jnp.allclose(out1, ref1, atol=5e-2, rtol=5e-2), "mismatch vs reference (case 1)"

    # Case 2: input that exercises x.view(-1, 18) and the padded-batch path.
    x2 = jax.random.normal(kx2, (5, 3, IN_DIM), jnp.float32)
    out2 = jax.block_until_ready(fwd(x2, w_stack, b_stack))
    ref2 = reference_forward(x2, params)
    assert out2.shape == (15, num_actions)
    assert jnp.allclose(out2, ref2, atol=5e-2, rtol=5e-2), "mismatch vs reference (case 2)"

    print("KERNEL_OK")
</pallas_src>

<mosaic_0001>
module attributes {stable_mosaic.version = 11 : i64} {
  func.func @mlp_kernel(%arg0: i32, %arg1: memref<8x18xf32, #tpu.memory_space<vmem>>, %arg2: memref<4x64x128xbf16, #tpu.memory_space<vmem>>, %arg3: memref<4x128xf32, #tpu.memory_space<vmem>>, %arg4: memref<8x4xf32, #tpu.memory_space<vmem>>) attributes {dimension_semantics = [#tpu.dimension_semantics<parallel>], iteration_bounds = array<i64: 1>, scalar_prefetch = 0 : i64, scratch_operands = 0 : i64, tpu.core_type = #tpu.core_type<tc>, window_params = [{transform_indices = @transform_0, window_bounds = array<i64: 8, 18>}, {pipeline_mode = #tpu.pipeline_mode<synchronous>, transform_indices = @transform_1, window_bounds = array<i64: 4, 64, 128>}, {pipeline_mode = #tpu.pipeline_mode<synchronous>, transform_indices = @transform_2, window_bounds = array<i64: 4, 128>}, {transform_indices = @transform_3, window_bounds = array<i64: 8, 4>}]} {
    %c0 = arith.constant 0 : index
    %c0_0 = arith.constant 0 : index
    %0 = vector.load %arg1[%c0, %c0_0] : memref<8x18xf32, #tpu.memory_space<vmem>>, vector<8x18xf32>
    %1 = arith.truncf %0 : vector<8x18xf32> to vector<8x18xbf16>
    %c0_1 = arith.constant 0 : index
    %c0_2 = arith.constant 0 : index
    %c0_3 = arith.constant 0 : index
    %2 = vector.load %arg2[%c0_1, %c0_2, %c0_3] : memref<4x64x128xbf16, #tpu.memory_space<vmem>>, vector<1x18x32xbf16>
    %3 = vector.shape_cast %2 : vector<1x18x32xbf16> to vector<18x32xbf16>
    %cst = arith.constant dense<0.000000e+00> : vector<8x32xf32>
    %4 = tpu.matmul %1, %3, %cst {dimension_numbers = #tpu.dot_dimension_numbers<[1], [0], [0], [1], [0, 0, 1, 1], [], []>} : vector<8x18xbf16>, vector<18x32xbf16>, vector<8x32xf32> -> vector<8x32xf32>
    %c0_4 = arith.constant 0 : index
    %c0_5 = arith.constant 0 : index
    %5 = vector.load %arg3[%c0_4, %c0_5] : memref<4x128xf32, #tpu.memory_space<vmem>>, vector<1x32xf32>
    %6 = vector.broadcast %5 : vector<1x32xf32> to vector<8x32xf32>
    %7 = arith.addf %4, %6 : vector<8x32xf32>
    %cst_6 = arith.constant 0.000000e+00 : f32
    %8 = vector.broadcast %cst_6 : f32 to vector<8x32xf32>
    %9 = arith.maximumf %7, %8 : vector<8x32xf32>
    %10 = arith.truncf %9 : vector<8x32xf32> to vector<8x32xbf16>
    %c1 = arith.constant 1 : index
    %c0_7 = arith.constant 0 : index
    %c0_8 = arith.constant 0 : index
    %11 = vector.load %arg2[%c1, %c0_7, %c0_8] : memref<4x64x128xbf16, #tpu.memory_space<vmem>>, vector<1x32x64xbf16>
    %12 = vector.shape_cast %11 : vector<1x32x64xbf16> to vector<32x64xbf16>
    %cst_9 = arith.constant dense<0.000000e+00> : vector<8x64xf32>
    %13 = tpu.matmul %10, %12, %cst_9 {dimension_numbers = #tpu.dot_dimension_numbers<[1], [0], [0], [1], [0, 0, 1, 1], [], []>} : vector<8x32xbf16>, vector<32x64xbf16>, vector<8x64xf32> -> vector<8x64xf32>
    %c1_10 = arith.constant 1 : index
    %c0_11 = arith.constant 0 : index
    %14 = vector.load %arg3[%c1_10, %c0_11] : memref<4x128xf32, #tpu.memory_space<vmem>>, vector<1x64xf32>
    %15 = vector.broadcast %14 : vector<1x64xf32> to vector<8x64xf32>
    %16 = arith.addf %13, %15 : vector<8x64xf32>
    %cst_12 = arith.constant 0.000000e+00 : f32
    %17 = vector.broadcast %cst_12 : f32 to vector<8x64xf32>
    %18 = arith.maximumf %16, %17 : vector<8x64xf32>
    %19 = arith.truncf %18 : vector<8x64xf32> to vector<8x64xbf16>
    %c2 = arith.constant 2 : index
    %c0_13 = arith.constant 0 : index
    %c0_14 = arith.constant 0 : index
    %20 = vector.load %arg2[%c2, %c0_13, %c0_14] : memref<4x64x128xbf16, #tpu.memory_space<vmem>>, vector<1x64x32xbf16>
    %21 = vector.shape_cast %20 : vector<1x64x32xbf16> to vector<64x32xbf16>
    %cst_15 = arith.constant dense<0.000000e+00> : vector<8x32xf32>
    %22 = tpu.matmul %19, %21, %cst_15 {dimension_numbers = #tpu.dot_dimension_numbers<[1], [0], [0], [1], [0, 0, 1, 1], [], []>} : vector<8x64xbf16>, vector<64x32xbf16>, vector<8x32xf32> -> vector<8x32xf32>
    %c2_16 = arith.constant 2 : index
    %c0_17 = arith.constant 0 : index
    %23 = vector.load %arg3[%c2_16, %c0_17] : memref<4x128xf32, #tpu.memory_space<vmem>>, vector<1x32xf32>
    %24 = vector.broadcast %23 : vector<1x32xf32> to vector<8x32xf32>
    %25 = arith.addf %22, %24 : vector<8x32xf32>
    %cst_18 = arith.constant 0.000000e+00 : f32
    %26 = vector.broadcast %cst_18 : f32 to vector<8x32xf32>
    %27 = arith.maximumf %25, %26 : vector<8x32xf32>
    %28 = arith.truncf %27 : vector<8x32xf32> to vector<8x32xbf16>
    %c3 = arith.constant 3 : index
    %c0_19 = arith.constant 0 : index
    %c0_20 = arith.constant 0 : index
    %29 = vector.load %arg2[%c3, %c0_19, %c0_20] : memref<4x64x128xbf16, #tpu.memory_space<vmem>>, vector<1x32x128xbf16>
    %30 = vector.shape_cast %29 : vector<1x32x128xbf16> to vector<32x128xbf16>
    %cst_21 = arith.constant dense<0.000000e+00> : vector<8x128xf32>
    %31 = tpu.matmul %28, %30, %cst_21 {dimension_numbers = #tpu.dot_dimension_numbers<[1], [0], [0], [1], [0, 0, 1, 1], [], []>} : vector<8x32xbf16>, vector<32x128xbf16>, vector<8x128xf32> -> vector<8x128xf32>
    %c3_22 = arith.constant 3 : index
    %c0_23 = arith.constant 0 : index
    %32 = vector.load %arg3[%c3_22, %c0_23] : memref<4x128xf32, #tpu.memory_space<vmem>>, vector<1x128xf32>
    %33 = vector.broadcast %32 : vector<1x128xf32> to vector<8x128xf32>
    %34 = arith.addf %31, %33 : vector<8x128xf32>
    %35 = vector.extract_strided_slice %34 {offsets = [0, 0], sizes = [8, 4], strides = [1, 1]} : vector<8x128xf32> to vector<8x4xf32>
    %c0_24 = arith.constant 0 : index
    %c0_25 = arith.constant 0 : index
    %36 = vector.load %arg4[%c0_24, %c0_25] : memref<8x4xf32, #tpu.memory_space<vmem>>, vector<8x4xf32>
    tpu.vector_store %arg4[%c0_24, %c0_25], %35 {strides = array<i32>} : memref<8x4xf32, #tpu.memory_space<vmem>>, vector<8x4xf32>,
    return
  }
  func.func @transform_0(%arg0: i32) -> (i32, i32) {
    %c0_i32 = arith.constant 0 : i32
    %c0_i32_0 = arith.constant 0 : i32
    return %arg0, %c0_i32 : i32, i32
  }
  func.func @transform_1(%arg0: i32) -> (i32, i32, i32) {
    %c0_i32 = arith.constant 0 : i32
    %c0_i32_0 = arith.constant 0 : i32
    %c0_i32_1 = arith.constant 0 : i32
    %c0_i32_2 = arith.constant 0 : i32
    return %c0_i32, %c0_i32_0, %c0_i32_1 : i32, i32, i32
  }
  func.func @transform_2(%arg0: i32) -> (i32, i32) {
    %c0_i32 = arith.constant 0 : i32
    %c0_i32_0 = arith.constant 0 : i32
    %c0_i32_1 = arith.constant 0 : i32
    return %c0_i32, %c0_i32_0 : i32, i32
  }
  func.func @transform_3(%arg0: i32) -> (i32, i32) {
    %c0_i32 = arith.constant 0 : i32
    %c0_i32_0 = arith.constant 0 : i32
    return %arg0, %c0_i32 : i32, i32
  }
}

</mosaic_0001>

<bundles_post_ra>
// kernel: net_forward.1
= control target key start
LH: loop header
LB: loop body
LE: loop exit
PB: predicated region body
PF: predicated region fallthrough
CT: control target
= control target key end

     0   :  { %8 = vsyncpa [#allocation3], 0  ;;  %s405_s0 = inlined_call_operand.hbm [shape: f32[8,18], index: 0, kind: input, shape index: {}]   ;;  %s406_s1 = inlined_call_operand.hbm [shape: bf16[4,64,128], index: 1, kind: input, shape index: {}]   ;;  %s407_s2 = inlined_call_operand.hbm [shape: f32[4,128], index: 2, kind: input, shape index: {}]   ;;  %s408_s3 = inlined_call_operand.vmem [shape: f32[8,4], index: 3, kind: output, shape index: {}]  }
   0x1   :  { %9 = vsyncpa [#allocation5], 0  ;;  %s25_s14 = sshll.u32 %s406_s1, 4  ;;  %s366_s15 = smov [#allocation4]   ;;  %s26_s14 = int_to_ptr.hbm [resolvable:$true] %s25_s14 }
   0x2   :  { %s27_s16 = sshll.u32 %s366_s15, 4  ;;  %s15_s19 = sshll.u32 %s405_s0, 4  ;;  %s28_s16 = int_to_ptr.vmem [resolvable:$true] %s27_s16  ;;  %s16_s19 = int_to_ptr.hbm [resolvable:$true] %s15_s19 }
   0x3   :  { %s367_s20 = smov 64   ;;  %s368_s21 = smov 4  }
   0x4   :  { %33 = dma.hbm_to_vmem [thread:$0]  %s26_s14, 2048, %s28_s16, [#allocation5], %s367_s20, %s367_s20, %s368_s21  }
   0x5   :  { %s369_s22 = smov [#allocation2]   ;;  %s39_s26 = sshll.u32 %s407_s2, 4  ;;  %s40_s26 = int_to_ptr.hbm [resolvable:$true] %s39_s26 }
   0x6   :  { %s17_s23 = sshll.u32 %s369_s22, 4  ;;  %s370_s1 = smov [#allocation6]   ;;  %s18_s23 = int_to_ptr.vmem [resolvable:$true] %s17_s23 }
   0x7   :  { %20 = dma.hbm_to_vmem [thread:$0]  %s16_s19, 128, %s18_s23, [#allocation3]  }
   0x8   :  { %s41_s27 = sshll.u32 %s370_s1, 4  ;;  %s42_s27 = int_to_ptr.vmem [resolvable:$true] %s41_s27 }
   0x9   :  { %44 = dma.hbm_to_vmem [thread:$0]  %s40_s26, 64, %s42_s27, [#allocation5]  }
   0xa   :  { %362 = dma.done.wait [#allocation3], 128  }
   0xb   :  { %363 = vsyncadd [#allocation3], 4294967168 }
   0xc   :  { %364 = dma.done.wait [#allocation5], 2112  }
   0xd   :  { %365 = vsyncadd [#allocation5], 4294965184  ;;  %v62_v0 = vld [vmem:[#allocation4 + $0x8] sm:$0x1]  ;;  %vm78_vm0 = vcmask 1040384   ;;  %v272_v4 = vld [vmem:[#allocation4] sm:$0xff] }
   0xe   :  { %v70_v1 = vunpack.c.l.b16 %v62_v0  ;;  %v58_v5 = vld [vmem:[#allocation2] sm:$0xff]  ;;  %vm74_vm1 = vcmask 146432   ;;  %v274_v7 = vld [vmem:[#allocation4 + $0x28] sm:$0xff]  ;;  %v273_v8 = vld [vmem:[#allocation4 + $0x20] sm:$0xff]  ;;  %vm116_vm2 = vcmask 261120   ;;  %vm170_vm3 = vcmask 523264  }
   0xf   :  { %v59_v6 = vpack.c.bf16 %v58_v5, %v58_v5  ;;  %126 = vmatpush.bf16.msra.mxu1 %v274_v7  ;;  %v278_v9 = vld [vmem:[#allocation4 + $0x58] sm:$0xff]  ;;  %v277_v10 = vld [vmem:[#allocation4 + $0x50] sm:$0xff]  ;;  %v286_v11 = vld [vmem:[#allocation6] ss:$0 sm:$0xff]  ;;  %vm224_vm4 = vcmask 31744  }
  0x10   :  { %v72_v2 = vpack.c.b16 %v70_v1, %v70_v1  ;;  %178 = vmatpush.bf16.msra.mxu2 %v278_v9  ;;  %v276_v17 = vld [vmem:[#allocation4 + $0x48] sm:$0xff]  ;;  %v275_v18 = vld [vmem:[#allocation4 + $0x40] sm:$0xff] }
  0x11   :  { %v287_v19 = vld [vmem:[#allocation6 + $0x1] ss:$0 sm:$0xff]  ;;  %v280_v25 = vld [vmem:[#allocation4 + $0x68] sm:$0xff]  ;;  %v288_v27 = vld [vmem:[#allocation6 + $0x2] ss:$0 sm:$0xff] }
  0x12   :  { %v80_v3 = vsel %vm78_vm0, %v72_v2, 0  ;;  %217 = vmatpush.bf16.msra.mxu3 %v280_v25  ;;  %v279_v26 = vld [vmem:[#allocation4 + $0x60] sm:$0xff] }
  0x13   :  { %88 = vmatpush.bf16.msra.mxu0 %v80_v3  ;;  %127 = vmatpush.bf16.msra.mxu1 %v273_v8  ;;  %v289_v33 = vld [vmem:[#allocation6 + $0x3] ss:$0 sm:$0xff] }
  0x14   :  { %179 = vmatpush.bf16.msra.mxu2 %v277_v10 }
  0x16   :  { %218 = vmatpush.bf16.msra.mxu3 %v279_v26 }
  0x17   :  { %89 = vmatpush.bf16.msra.mxu0 %v272_v4 }
  0x18   :  { %180 = vmatpush.bf16.msra.mxu2 %v276_v17 }
  0x1a   :  { %236 = vmatmul.msk.bf16.vlgmr.msra.gmra.mxu0 %vm74_vm1, %v59_v6 }
  0x1c   :  { %181 = vmatpush.bf16.msra.mxu2 %v275_v18 }
  0x97   :  { %v91_v12 = vpop.f32.mrf.mxu0 }
  0x98   :  { %v92_v13 = vadd.f32 %v286_v11, %v91_v12 }
  0x9a   :  { %v95_v14 = vmax.f32 %v92_v13, 0.0 }
  0x9c   :  { %v96_v15 = vpack.c.bf16 %v95_v14, %v95_v14 }
  0x9e   :  { %245 = vmatmul.msk.bf16.vlgmr.msra.gmra.mxu1 %vm116_vm2, %v96_v15 }
  0x9f   :  { %v93_v16 = vpop.f32.mrf.mxu0 }
 0x11b   :  { %v129_v20 = vpop.f32.mrf.mxu1 }
 0x11c   :  { %v130_v21 = vadd.f32 %v287_v19, %v129_v20 }
 0x11e   :  { %v133_v22 = vmax.f32 %v130_v21, 0.0 }
 0x120   :  { %v134_v23 = vpack.c.bf16 %v133_v22, %v133_v22 }
 0x122   :  { %262 = vmatmul.msk.bf16.vlgmr.msra.gmra.mxu2 %vm170_vm3, %v134_v23 }
 0x123   :  { %v131_v24 = vpop.f32.mrf.mxu1 }
 0x1a5   :  { %v183_v28 = vpop.f32.mrf.mxu2 }
 0x1a6   :  { %v184_v29 = vadd.f32 %v288_v27, %v183_v28 }
 0x1a8   :  { %v187_v30 = vmax.f32 %v184_v29, 0.0 }
 0x1aa   :  { %v188_v31 = vpack.c.bf16 %v187_v30, %v187_v30 }
 0x1ac   :  { %271 = vmatmul.msk.bf16.vlgmr.msra.gmra.mxu3 %vm116_vm2, %v188_v31 }
 0x1ad   :  { %v185_v32 = vpop.f32.mrf.mxu2 }
 0x22f   :  { %v220_v34 = vpop.f32.mrf.mxu3 }
 0x230   :  { %v221_v35 = vadd.f32 %v289_v33, %v220_v34 }
 0x232   :  { %225 = vst.msk [vmem:[%s408_s3] sm:$0xff] %vm224_vm4, %v221_v35 }
 0x237   :  { %v222_v36 = vpop.f32.mrf.mxu3 }
 0x238   :  { %230 = vsyncpa [#allocation3], 1 }
 0x239   :  { %231 = vsyncpa [#allocation5], 1 }

</bundles_post_ra>
